<compile_context>
chip_gen: v7x
topology: tpu7x:2x2x1
jax: 0.10.0
libtpu: 0.0.40
codegen_flags: <defaults>
</compile_context>

<pallas_src>
import functools
import math

import numpy as np
import jax
import jax.numpy as jnp
from jax.experimental import pallas as pl
from jax.experimental.pallas import tpu as pltpu


def _round_up(x, m):
    return (x + m - 1) // m * m


# ----------------------------------------------------------------------------
# Pallas kernels
# ----------------------------------------------------------------------------

def _mlp_kernel(x_ref, w1_ref, b1_ref, w2_ref, b2_ref, o_ref):
    """`self.dec_output` Sequential: Linear -> ReLU -> (Dropout) -> Linear -> ReLU -> (Dropout)."""
    x = x_ref[...].astype(jnp.bfloat16)
    h = jnp.maximum(
        jnp.dot(x, w1_ref[...], preferred_element_type=jnp.float32) + b1_ref[...], 0.0)
    o_ref[...] = jnp.maximum(
        jnp.dot(h.astype(jnp.bfloat16), w2_ref[...],
                preferred_element_type=jnp.float32) + b2_ref[...], 0.0)


def _decoder_layer_kernel(nrel_ref, nobj_ref,                       # scalar prefetch (SMEM)
                          dec_ref, enc_ref,
                          wq_ref, bq_ref, wk_ref, bk_ref, wv_ref, bv_ref,
                          wfc_ref, bfc_ref, g1_ref, be1_ref,
                          w1_ref, b1_ref, w2_ref, b2_ref, g2_ref, be2_ref,
                          out_ref,
                          bias_ref, acc_ref,
                          *, n_head, lq, lk):
    """One DecoderLayer; grid step = (batch element, attention head)."""
    b = pl.program_id(0)
    h = pl.program_id(1)

    x_q = dec_ref[0]                        # (Lq, D) f32 -- also the residual
    x_k = enc_ref[0]                        # (Lk, D) f32
    xq_b = x_q.astype(jnp.bfloat16)
    xk_b = x_k.astype(jnp.bfloat16)

    # ---- per-batch init (first head): zero accumulator + additive key-pad bias ----
    @pl.when(h == 0)
    def _():
        acc_ref[...] = jnp.zeros_like(acc_ref)
        key_pos = jax.lax.broadcasted_iota(jnp.int32, (lq, lk), 1)
        bias_ref[...] = jnp.where(key_pos >= nobj_ref[b], -1e30, 0.0).astype(jnp.float32)

    # ---- one attention head (all 2-D MXU dots; 1/sqrt(d_k) pre-folded in wq/bq) ----
    q = jnp.dot(xq_b, wq_ref[0], preferred_element_type=jnp.float32) + bq_ref[0]
    k = jnp.dot(xk_b, wk_ref[0], preferred_element_type=jnp.float32) + bk_ref[0]
    v = jnp.dot(xk_b, wv_ref[0], preferred_element_type=jnp.float32) + bv_ref[0]

    s = jax.lax.dot_general(q.astype(jnp.bfloat16), k.astype(jnp.bfloat16),
                            (((1,), (1,)), ((), ())),
                            preferred_element_type=jnp.float32)     # (Lq, Lk)
    s = s + bias_ref[...]                                           # masked_fill (finite)
    s = s - jnp.max(s, axis=-1, keepdims=True)
    p = jnp.exp(s)
    p = p * pl.reciprocal(jnp.sum(p, axis=-1, keepdims=True), approx=True)  # softmax(dim=2)

    o_h = jnp.dot(p.astype(jnp.bfloat16), v.astype(jnp.bfloat16),
                  preferred_element_type=jnp.float32)               # (Lq, d_v)
    acc_ref[...] += jnp.dot(o_h.astype(jnp.bfloat16), wfc_ref[0],
                            preferred_element_type=jnp.float32)     # (Lq, D) partial fc

    # ---- finalize on last head: fc bias + residual + LN + mask + FFN + LN + mask ----
    @pl.when(h == n_head - 1)
    def _():
        y = acc_ref[...] + bfc_ref[...] + x_q
        mu = jnp.mean(y, axis=-1, keepdims=True)
        var = jnp.mean(jnp.square(y - mu), axis=-1, keepdims=True)
        y = (y - mu) * jax.lax.rsqrt(var + 1e-5) * g1_ref[...] + be1_ref[...]

        q_pos = jax.lax.broadcasted_iota(jnp.int32, (lq, 1), 0)
        npm = (q_pos < nrel_ref[b]).astype(jnp.float32)             # non_pad_mask
        y = y * npm

        h1 = jnp.maximum(
            jnp.dot(y.astype(jnp.bfloat16), w1_ref[...],
                    preferred_element_type=jnp.float32) + b1_ref[...], 0.0)
        z = jnp.dot(h1.astype(jnp.bfloat16), w2_ref[...],
                    preferred_element_type=jnp.float32) + b2_ref[...]
        z = z + y
        mu2 = jnp.mean(z, axis=-1, keepdims=True)
        var2 = jnp.mean(jnp.square(z - mu2), axis=-1, keepdims=True)
        z = (z - mu2) * jax.lax.rsqrt(var2 + 1e-5) * g2_ref[...] + be2_ref[...]
        out_ref[0] = z * npm


# ----------------------------------------------------------------------------
# pallas_call wrappers
# ----------------------------------------------------------------------------

def mlp_forward(x, w1, b1, w2, b2, *, tm=512):
    m, d_in = x.shape
    d_out = w2.shape[1]
    tm = min(tm, _round_up(m, 8))
    m_pad = _round_up(m, tm)
    if m_pad != m:
        x = jnp.pad(x, ((0, m_pad - m), (0, 0)))
    out = pl.pallas_call(
        _mlp_kernel,
        grid=(m_pad // tm,),
        in_specs=[pl.BlockSpec((tm, d_in), lambda i: (i, 0)),
                  pl.BlockSpec(w1.shape, lambda i: (0, 0)),
                  pl.BlockSpec(b1.shape, lambda i: (0, 0)),
                  pl.BlockSpec(w2.shape, lambda i: (0, 0)),
                  pl.BlockSpec(b2.shape, lambda i: (0, 0))],
        out_specs=pl.BlockSpec((tm, d_out), lambda i: (i, 0)),
        out_shape=jax.ShapeDtypeStruct((m_pad, d_out), jnp.float32),
        compiler_params=pltpu.CompilerParams(dimension_semantics=("parallel",)),
    )(x, w1, b1, w2, b2)
    return out[:m]


def decoder_layer_forward(dec, enc, num_rel_arr, num_obj_arr, lp):
    bsz, lq, d = dec.shape
    lk = enc.shape[1]
    n_head = lp["wq3"].shape[0]

    weights = (lp["wq3"], lp["bq3"], lp["wk3"], lp["bk3"], lp["wv3"], lp["bv3"],
               lp["wfc3"], lp["bfc"], lp["g1"], lp["be1"],
               lp["w1"], lp["b1"], lp["w2"], lp["b2"], lp["g2"], lp["be2"])

    def const_spec(shape):
        nd = len(shape)
        return pl.BlockSpec(shape, lambda b, h, nr, no, _nd=nd: (0,) * _nd)

    def head_spec(shape):
        nd = len(shape)
        return pl.BlockSpec((1,) + tuple(shape[1:]),
                            lambda b, h, nr, no, _nd=nd: (h,) + (0,) * (_nd - 1))

    w_specs = ([head_spec(w.shape) for w in weights[:7]]       # wq3..wfc3 (head-major)
               + [const_spec(w.shape) for w in weights[7:]])   # biases / LN / FFN weights

    kernel = functools.partial(_decoder_layer_kernel, n_head=n_head, lq=lq, lk=lk)
    grid_spec = pltpu.PrefetchScalarGridSpec(
        num_scalar_prefetch=2,
        grid=(bsz, n_head),
        in_specs=([pl.BlockSpec((1, lq, d), lambda b, h, nr, no: (b, 0, 0)),
                   pl.BlockSpec((1, lk, d), lambda b, h, nr, no: (b, 0, 0))]
                  + w_specs),
        out_specs=pl.BlockSpec((1, lq, d), lambda b, h, nr, no: (b, 0, 0)),
        scratch_shapes=[pltpu.VMEM((lq, lk), jnp.float32),     # additive key-pad bias
                        pltpu.VMEM((lq, d), jnp.float32)],     # attention accumulator
    )
    return pl.pallas_call(
        kernel,
        grid_spec=grid_spec,
        out_shape=jax.ShapeDtypeStruct((bsz, lq, d), jnp.float32),
        compiler_params=pltpu.CompilerParams(
            dimension_semantics=("parallel", "arbitrary")),
    )(num_rel_arr, num_obj_arr, dec, enc, *weights)


# ----------------------------------------------------------------------------
# TransformerDecoder forward (glue in plain JAX, hot path in Pallas)
# ----------------------------------------------------------------------------

def _pad_split(x, nums, length):
    """torch.split(num, dim=0) + pad_sequence(batch_first=True) as one gather."""
    nums_np = np.asarray(nums)
    offs = np.concatenate([[0], np.cumsum(nums_np)[:-1]])
    pos = np.arange(length)[None, :]
    valid = pos < nums_np[:, None]                      # (bsz, length)
    idx = np.where(valid, offs[:, None] + pos, 0)       # (bsz, length)
    gathered = x[jnp.asarray(idx, dtype=jnp.int32)]     # (bsz, length, D)
    return gathered * jnp.asarray(valid, dtype=x.dtype)[..., None]


def transformer_decoder_forward(params, rel_inputs, obj_inputs, num_rel, num_obj):
    num_rel = [int(n) for n in num_rel]
    num_obj = [int(n) for n in num_obj]
    bsz = len(num_rel)
    d = rel_inputs.shape[-1]
    lq = _round_up(max(num_rel), 8)   # pad seq lens to sublane multiples (extra rows masked)
    lk = _round_up(max(num_obj), 8)

    dec = _pad_split(rel_inputs, num_rel, lq)           # (bsz, Lq, D)
    enc = _pad_split(obj_inputs, num_obj, lk)           # (bsz, Lk, D)

    # self.dec_output MLP over cat([dec_output, enc_input], dim=1)
    cat2d = jnp.concatenate([dec, enc], axis=1).reshape(bsz * (lq + lk), d)
    out2d = mlp_forward(cat2d, params["mlp_w1"], params["mlp_b1"],
                        params["mlp_w2"], params["mlp_b2"])
    cat = out2d.reshape(bsz, lq + lk, d)
    dec, enc = cat[:, :lq, :], cat[:, lq:, :]

    nrel_arr = jnp.asarray(num_rel, dtype=jnp.int32)
    nobj_arr = jnp.asarray(num_obj, dtype=jnp.int32)
    for lp in params["layers"]:
        dec = decoder_layer_forward(dec, enc, nrel_arr, nobj_arr, lp)

    # dec_output[non_pad_mask.squeeze(-1)] -> (#total_rel, D), single gather
    gather_idx = np.concatenate(
        [b * lq + np.arange(n) for b, n in enumerate(num_rel)]).astype(np.int32)
    return dec.reshape(bsz * lq, d)[jnp.asarray(gather_idx)]


# ----------------------------------------------------------------------------
# deterministic parameter init (kernel-ready layout)
# ----------------------------------------------------------------------------

def init_params(key, n_layers, n_head, d_k, d_v, d_model, d_inner, d_mid):
    cnt = [0]

    def nrm(shape, std):
        cnt[0] += 1
        return std * jax.random.normal(jax.random.fold_in(key, cnt[0]), shape,
                                       dtype=jnp.float32)

    def per_head(w, bias, dh, scale=1.0):
        # torch layout (d_model, n_head*dh) -> head-major (n_head, d_model, dh);
        # fold `scale` (softmax temperature) in; weights -> bf16, biases stay f32.
        w3 = (w.reshape(d_model, n_head, dh).transpose(1, 0, 2) * scale)
        b3 = (bias.reshape(n_head, 1, dh) * scale)
        return w3.astype(jnp.bfloat16), b3.astype(jnp.float32)

    params = {
        # TODO(synk): the original module hardcodes nn.Linear(2052, 512)/(512, 2052)
        # (i.e. requires d_model == 2052); parameterized as (d_model, d_mid) so the
        # demo runs at small lane-dense shapes with identical semantics.
        "mlp_w1": nrm((d_model, d_mid), 0.1).astype(jnp.bfloat16),
        "mlp_b1": nrm((1, d_mid), 0.01),
        "mlp_w2": nrm((d_mid, d_model), 0.1).astype(jnp.bfloat16),
        "mlp_b2": nrm((1, d_model), 0.01),
        "layers": [],
    }
    inv_temp = 1.0 / math.sqrt(d_k)     # folded into wq / bq
    for _ in range(n_layers):
        wq3, bq3 = per_head(
            nrm((d_model, n_head * d_k), math.sqrt(2.0 / (d_model + d_k))),
            nrm((n_head * d_k,), 0.01), d_k, scale=inv_temp)
        wk3, bk3 = per_head(
            nrm((d_model, n_head * d_k), math.sqrt(2.0 / (d_model + d_k))),
            nrm((n_head * d_k,), 0.01), d_k)
        wv3, bv3 = per_head(
            nrm((d_model, n_head * d_v), math.sqrt(2.0 / (d_model + d_v))),
            nrm((n_head * d_v,), 0.01), d_v)
        wfc = nrm((n_head * d_v, d_model), math.sqrt(2.0 / (n_head * d_v + d_model)))
        lp = {
            "wq3": wq3, "bq3": bq3, "wk3": wk3, "bk3": bk3, "wv3": wv3, "bv3": bv3,
            "wfc3": wfc.reshape(n_head, d_v, d_model).astype(jnp.bfloat16),
            "bfc": nrm((1, d_model), 0.01),
            "g1": jnp.ones((1, d_model), jnp.float32),
            "be1": jnp.zeros((1, d_model), jnp.float32),
            "w1": nrm((d_model, d_inner),
                      math.sqrt(2.0 / (d_model + d_inner))).astype(jnp.bfloat16),
            "b1": nrm((1, d_inner), 0.01),
            "w2": nrm((d_inner, d_model),
                      math.sqrt(2.0 / (d_model + d_inner))).astype(jnp.bfloat16),
            "b2": nrm((1, d_model), 0.01),
            "g2": jnp.ones((1, d_model), jnp.float32),
            "be2": jnp.zeros((1, d_model), jnp.float32),
        }
        params["layers"].append(lp)
    return params


if __name__ == "__main__":
    # small but lane-dense demo shapes (all feature dims multiples of 128)
    n_layers, n_head, d_k, d_v = 2, 4, 32, 32
    d_model, d_inner, d_mid = 128, 256, 128
    num_rel = [5, 8]   # relations per image (queries)
    num_obj = [6, 4]   # objects per image (keys/values)

    key = jax.random.PRNGKey(0)
    k1, k2, k3 = jax.random.split(key, 3)
    rel_inputs = jax.random.normal(k1, (sum(num_rel), d_model), jnp.float32)
    obj_inputs = jax.random.normal(k2, (sum(num_obj), d_model), jnp.float32)
    params = init_params(k3, n_layers, n_head, d_k, d_v, d_model, d_inner, d_mid)

    out = transformer_decoder_forward(params, rel_inputs, obj_inputs, num_rel, num_obj)
    out = jax.block_until_ready(out)
    assert out.shape == (sum(num_rel), d_model), out.shape
    assert bool(jnp.all(jnp.isfinite(out)))
    print("KERNEL_OK")
</pallas_src>

<mosaic_0001>
module attributes {stable_mosaic.version = 11 : i64} {
  func.func @_mlp_kernel(%arg0: i32, %arg1: memref<32x128xf32, #tpu.memory_space<vmem>>, %arg2: memref<128x128xbf16, #tpu.memory_space<vmem>>, %arg3: memref<1x128xf32, #tpu.memory_space<vmem>>, %arg4: memref<128x128xbf16, #tpu.memory_space<vmem>>, %arg5: memref<1x128xf32, #tpu.memory_space<vmem>>, %arg6: memref<32x128xf32, #tpu.memory_space<vmem>>) attributes {dimension_semantics = [#tpu.dimension_semantics<parallel>], iteration_bounds = array<i64: 1>, scalar_prefetch = 0 : i64, scratch_operands = 0 : i64, tpu.core_type = #tpu.core_type<tc>, window_params = [{transform_indices = @transform_0, window_bounds = array<i64: 32, 128>}, {pipeline_mode = #tpu.pipeline_mode<synchronous>, transform_indices = @transform_1, window_bounds = array<i64: 128, 128>}, {pipeline_mode = #tpu.pipeline_mode<synchronous>, transform_indices = @transform_2, window_bounds = array<i64: 1, 128>}, {pipeline_mode = #tpu.pipeline_mode<synchronous>, transform_indices = @transform_3, window_bounds = array<i64: 128, 128>}, {pipeline_mode = #tpu.pipeline_mode<synchronous>, transform_indices = @transform_4, window_bounds = array<i64: 1, 128>}, {transform_indices = @transform_5, window_bounds = array<i64: 32, 128>}]} {
    %c0 = arith.constant 0 : index
    %c0_0 = arith.constant 0 : index
    %0 = vector.load %arg1[%c0, %c0_0] : memref<32x128xf32, #tpu.memory_space<vmem>>, vector<32x128xf32>
    %1 = arith.truncf %0 : vector<32x128xf32> to vector<32x128xbf16>
    %c0_1 = arith.constant 0 : index
    %c0_2 = arith.constant 0 : index
    %2 = vector.load %arg2[%c0_1, %c0_2] : memref<128x128xbf16, #tpu.memory_space<vmem>>, vector<128x128xbf16>
    %cst = arith.constant dense<0.000000e+00> : vector<32x128xf32>
    %3 = tpu.matmul %1, %2, %cst {dimension_numbers = #tpu.dot_dimension_numbers<[1], [0], [0], [1], [0, 0, 1, 1], [], []>} : vector<32x128xbf16>, vector<128x128xbf16>, vector<32x128xf32> -> vector<32x128xf32>
    %c0_3 = arith.constant 0 : index
    %c0_4 = arith.constant 0 : index
    %4 = vector.load %arg3[%c0_3, %c0_4] : memref<1x128xf32, #tpu.memory_space<vmem>>, vector<1x128xf32>
    %5 = vector.broadcast %4 : vector<1x128xf32> to vector<32x128xf32>
    %6 = arith.addf %3, %5 : vector<32x128xf32>
    %cst_5 = arith.constant 0.000000e+00 : f32
    %7 = vector.broadcast %cst_5 : f32 to vector<32x128xf32>
    %8 = arith.maximumf %6, %7 : vector<32x128xf32>
    %9 = arith.truncf %8 : vector<32x128xf32> to vector<32x128xbf16>
    %c0_6 = arith.constant 0 : index
    %c0_7 = arith.constant 0 : index
    %10 = vector.load %arg4[%c0_6, %c0_7] : memref<128x128xbf16, #tpu.memory_space<vmem>>, vector<128x128xbf16>
    %cst_8 = arith.constant dense<0.000000e+00> : vector<32x128xf32>
    %11 = tpu.matmul %9, %10, %cst_8 {dimension_numbers = #tpu.dot_dimension_numbers<[1], [0], [0], [1], [0, 0, 1, 1], [], []>} : vector<32x128xbf16>, vector<128x128xbf16>, vector<32x128xf32> -> vector<32x128xf32>
    %c0_9 = arith.constant 0 : index
    %c0_10 = arith.constant 0 : index
    %12 = vector.load %arg5[%c0_9, %c0_10] : memref<1x128xf32, #tpu.memory_space<vmem>>, vector<1x128xf32>
    %13 = vector.broadcast %12 : vector<1x128xf32> to vector<32x128xf32>
    %14 = arith.addf %11, %13 : vector<32x128xf32>
    %cst_11 = arith.constant 0.000000e+00 : f32
    %15 = vector.broadcast %cst_11 : f32 to vector<32x128xf32>
    %16 = arith.maximumf %14, %15 : vector<32x128xf32>
    %c0_12 = arith.constant 0 : index
    %c0_13 = arith.constant 0 : index
    %17 = vector.load %arg6[%c0_12, %c0_13] : memref<32x128xf32, #tpu.memory_space<vmem>>, vector<32x128xf32>
    tpu.vector_store %arg6[%c0_12, %c0_13], %16 {strides = array<i32>} : memref<32x128xf32, #tpu.memory_space<vmem>>, vector<32x128xf32>,
    return
  }
  func.func @transform_0(%arg0: i32) -> (i32, i32) {
    %c0_i32 = arith.constant 0 : i32
    %c0_i32_0 = arith.constant 0 : i32
    return %arg0, %c0_i32 : i32, i32
  }
  func.func @transform_1(%arg0: i32) -> (i32, i32) {
    %c0_i32 = arith.constant 0 : i32
    %c0_i32_0 = arith.constant 0 : i32
    %c0_i32_1 = arith.constant 0 : i32
    return %c0_i32, %c0_i32_0 : i32, i32
  }
  func.func @transform_2(%arg0: i32) -> (i32, i32) {
    %c0_i32 = arith.constant 0 : i32
    %c0_i32_0 = arith.constant 0 : i32
    %c0_i32_1 = arith.constant 0 : i32
    return %c0_i32, %c0_i32_0 : i32, i32
  }
  func.func @transform_3(%arg0: i32) -> (i32, i32) {
    %c0_i32 = arith.constant 0 : i32
    %c0_i32_0 = arith.constant 0 : i32
    %c0_i32_1 = arith.constant 0 : i32
    return %c0_i32, %c0_i32_0 : i32, i32
  }
  func.func @transform_4(%arg0: i32) -> (i32, i32) {
    %c0_i32 = arith.constant 0 : i32
    %c0_i32_0 = arith.constant 0 : i32
    %c0_i32_1 = arith.constant 0 : i32
    return %c0_i32, %c0_i32_0 : i32, i32
  }
  func.func @transform_5(%arg0: i32) -> (i32, i32) {
    %c0_i32 = arith.constant 0 : i32
    %c0_i32_0 = arith.constant 0 : i32
    return %arg0, %c0_i32 : i32, i32
  }
}

</mosaic_0001>

<bundles_post_ra>
// kernel: tpu_custom_call.1
= control target key start
LH: loop header
LB: loop body
LE: loop exit
PB: predicated region body
PF: predicated region fallthrough
CT: control target
= control target key end

     0   :  { %10 = vsyncpa [#allocation3], 0  ;;  %s641_s0 = inlined_call_operand.hbm [shape: f32[32,128], index: 0, kind: input, shape index: {}]   ;;  %s642_s1 = inlined_call_operand.hbm [shape: bf16[128,128], index: 1, kind: input, shape index: {}]   ;;  %s643_s2 = inlined_call_operand.vmem [shape: f32[1,128], index: 2, kind: input, shape index: {}]   ;;  %s644_s3 = inlined_call_operand.hbm [shape: bf16[128,128], index: 3, kind: input, shape index: {}]   ;;  %s645_s4 = inlined_call_operand.vmem [shape: f32[1,128], index: 4, kind: input, shape index: {}]   ;;  %s646_s5 = inlined_call_operand.hbm [shape: f32[32,128], index: 5, kind: output, shape index: {}]  }
   0x1   :  { %11 = vsyncpa [#allocation6], 0 }
   0x2   :  { %12 = vsyncpa [#allocation4], 0  ;;  %s537_s18 = smov [#allocation5]   ;;  %s443_s22 = scalar_lea.hbm %s642_s1, 1024 }
   0x3   :  { %s30_s19 = sshll.u32 %s537_s18, 4  ;;  %p444_p0 = scmp.ne.s32.totalorder %s642_s1, %s443_s22  ;;  %s31_s19 = int_to_ptr.vmem [resolvable:$true] %s30_s19 }
   0x4   :  { %p447_p1 = scmp.lt.u32.totalorder %s443_s22, %s642_s1 }
   0x6   :  { %p449_p2 = pnand %p447_p1, %p444_p0 }
   0x8   :  { %452 = shalt.err (!%p449_p2)
}
   0x9   :  { %s453_s27 = scalar_lea.vmem %s31_s19, 1024  ;;  %p458_p4 = scmp.lt.s32.totalorder %s31_s19, %s31_s19 }
   0xa   :  { %p454_p3 = scmp.ne.s32.totalorder %s31_s19, %s453_s27  ;;  %p459_p5 = scmp.lt.s32.totalorder %s453_s27, %s453_s27 }
   0xc   :  { %p460_p6 = por %p459_p5, %p458_p4 }
   0xe   :  { %p461_p7 = pnand %p460_p6, %p454_p3 }
  0x10   :  { %464 = shalt.err (!%p461_p7)
}
  0x11   :  { %s538_s28 = smov 64   ;;  %s539_s29 = smov 4  }
  0x12   :  { %36 = dma.hbm_to_vmem [thread:$0]  %s642_s1, 1024, %s31_s19, [#allocation6], %s538_s28, %s538_s28, %s539_s29  }
  0x13   :  { %s540_s7 = smov [#allocation2]   ;;  %s465_s11 = scalar_lea.hbm %s641_s0, 512 }
  0x14   :  { %s18_s8 = sshll.u32 %s540_s7, 4  ;;  %p466_p8 = scmp.ne.s32.totalorder %s641_s0, %s465_s11  ;;  %s19_s8 = int_to_ptr.vmem [resolvable:$true] %s18_s8 }
  0x15   :  { %p469_p9 = scmp.lt.u32.totalorder %s465_s11, %s641_s0 }
  0x17   :  { %p471_p10 = pnand %p469_p9, %p466_p8 }
  0x19   :  { %474 = shalt.err (!%p471_p10)
}
  0x1a   :  { %s475_s16 = scalar_lea.vmem %s19_s8, 512  ;;  %p480_p12 = scmp.lt.s32.totalorder %s19_s8, %s19_s8 }
  0x1b   :  { %p476_p11 = scmp.ne.s32.totalorder %s19_s8, %s475_s16  ;;  %p481_p13 = scmp.lt.s32.totalorder %s475_s16, %s475_s16 }
  0x1d   :  { %p482_p0 = por %p481_p13, %p480_p12 }
  0x1f   :  { %p483_p1 = pnand %p482_p0, %p476_p11 }
  0x21   :  { %486 = shalt.err (!%p483_p1)
}
  0x22   :  { %s541_s1 = smov 128   ;;  %s542_s17 = smov 8  }
  0x23   :  { %24 = dma.hbm_to_vmem [thread:$0]  %s641_s0, 512, %s19_s8, [#allocation3], %s541_s1, %s541_s1, %s542_s17  }
  0x24   :  { %s543_s20 = smov [#allocation7]   ;;  %s487_s24 = scalar_lea.hbm %s644_s3, 1024 }
  0x25   :  { %s44_s21 = sshll.u32 %s543_s20, 4  ;;  %p488_p2 = scmp.ne.s32.totalorder %s644_s3, %s487_s24  ;;  %s45_s21 = int_to_ptr.vmem [resolvable:$true] %s44_s21 }
  0x26   :  { %p491_p3 = scmp.lt.u32.totalorder %s487_s24, %s644_s3 }
  0x28   :  { %p493_p4 = pnand %p491_p3, %p488_p2 }
  0x2a   :  { %496 = shalt.err (!%p493_p4)
}
  0x2b   :  { %s497_s6 = scalar_lea.vmem %s45_s21, 1024  ;;  %p502_p6 = scmp.lt.s32.totalorder %s45_s21, %s45_s21 }
  0x2c   :  { %p498_p5 = scmp.ne.s32.totalorder %s45_s21, %s497_s6  ;;  %p503_p7 = scmp.lt.s32.totalorder %s497_s6, %s497_s6 }
  0x2e   :  { %p504_p8 = por %p503_p7, %p502_p6 }
  0x30   :  { %p505_p9 = pnand %p504_p8, %p498_p5 }
  0x32   :  { %508 = shalt.err (!%p505_p9)
}
  0x33   :  { %50 = dma.hbm_to_vmem [thread:$0]  %s644_s3, 1024, %s45_s21, [#allocation6], %s538_s28, %s538_s28, %s539_s29  }
  0x34   :  { %531 = dma.done.wait [#allocation3], 512  }
  0x35   :  { %532 = vsyncadd [#allocation3], 4294966784 }
  0x36   :  { %533 = dma.done.wait [#allocation6], 2048  }
  0x37   :  { %534 = vsyncadd [#allocation6], 4294965248  ;;  %v427_v0 = vld [vmem:[#allocation5] sm:$0xff]   ;;  %v428_v1 = vld [vmem:[#allocation5 + $0x8] sm:$0xff]  }
  0x38   :  { %379 = vmatprep.subr.bf16.mxu0 %v427_v0  ;;  %v429_v2 = vld [vmem:[#allocation5 + $0x10] sm:$0xff]   ;;  %v430_v3 = vld [vmem:[#allocation5 + $0x18] sm:$0xff]   ;;  %v63_v4 = vld [vmem:[#allocation2] sm:$0xff] }
  0x39   :  { %380 = vmatpush3.bf16.msra.mxu0 %v427_v0  ;;  %v64_v5 = vld [vmem:[#allocation2 + $0x8] sm:$0xff]  ;;  %v435_v7 = vld [vmem:[#allocation7] sm:$0xff]   ;;  %v437_v10 = vld [vmem:[#allocation7 + $0x10] sm:$0xff]  }
  0x3a   :  { %381 = vmatprep.subr.bf16.mxu0 %v428_v1  ;;  %v67_v6 = vpack.c.bf16 %v64_v5, %v63_v4  ;;  %v436_v8 = vld [vmem:[#allocation7 + $0x8] sm:$0xff]   ;;  %v431_v9 = vld [vmem:[#allocation5 + $0x20] sm:$0xff]   ;;  %399 = vmatprep.subr.bf16.mxu1 %v435_v7  ;;  %v438_v12 = vld [vmem:[#allocation7 + $0x18] sm:$0xff]  }
  0x3b   :  { %400 = vmatpush3.bf16.msra.mxu1 %v435_v7  ;;  %v432_v11 = vld [vmem:[#allocation5 + $0x28] sm:$0xff]   ;;  %v433_v13 = vld [vmem:[#allocation5 + $0x30] sm:$0xff]   ;;  %v439_v14 = vld [vmem:[#allocation7 + $0x20] sm:$0xff]  }
  0x3c   :  { %395 = vmatprep.mubr.bf16.mxu0 %v67_v6  ;;  %401 = vmatprep.subr.bf16.mxu1 %v436_v8  ;;  %v434_v15 = vld [vmem:[#allocation5 + $0x38] sm:$0xff]   ;;  %v440_v16 = vld [vmem:[#allocation7 + $0x28] sm:$0xff]   ;;  %v65_v17 = vld [vmem:[#allocation2 + $0x10] sm:$0xff] }
  0x3d   :  { %382 = vmatpush3.bf16.msra.mxu0 %v428_v1  ;;  %v66_v18 = vld [vmem:[#allocation2 + $0x18] sm:$0xff]  ;;  %v441_v20 = vld [vmem:[#allocation7 + $0x30] sm:$0xff]   ;;  %v341_v22 = vld [vmem:[%s643_s2] ss:$0 sm:$0xff]  ;;  %s544_s2 = smov [#allocation8]  }
  0x3e   :  { %383 = vmatprep.subr.bf16.mxu0 %v429_v2  ;;  %v68_v19 = vpack.c.bf16 %v66_v18, %v65_v17  ;;  %v442_v21 = vld [vmem:[#allocation7 + $0x38] sm:$0xff]   ;;  %v350_v37 = vld [vmem:[%s645_s4] ss:$0 sm:$0xff]  ;;  %s328_s9 = sshll.u32 %s544_s2, 4  ;;  %s329_s9 = int_to_ptr.vmem [resolvable:$true] %s328_s9 }
  0x3f   :  { %402 = vmatpush3.bf16.msra.mxu1 %v436_v8  ;;  %s509_s4 = scalar_lea.vmem %s329_s9, 512  ;;  %p514_p11 = scmp.lt.s32.totalorder %s329_s9, %s329_s9 }
  0x40   :  { %403 = vmatprep.subr.bf16.mxu1 %v437_v10  ;;  %p510_p10 = scmp.ne.s32.totalorder %s329_s9, %s509_s4  ;;  %p515_p12 = scmp.lt.s32.totalorder %s509_s4, %s509_s4 }
  0x41   :  { %384 = vmatpush3.bf16.msra.mxu0 %v429_v2 }
  0x42   :  { %385 = vmatprep.subr.bf16.mxu0 %v430_v3  ;;  %p516_p13 = por %p515_p12, %p514_p11 }
  0x43   :  { %404 = vmatpush3.bf16.msra.mxu1 %v437_v10 }
  0x44   :  { %405 = vmatprep.subr.bf16.mxu1 %v438_v12  ;;  %p517_p0 = pnand %p516_p13, %p510_p10 }
  0x45   :  { %386 = vmatpush3.bf16.msra.mxu0 %v430_v3 }
  0x46   :  { %387 = vmatprep.subr.bf16.mxu0 %v431_v9 }
  0x47   :  { %406 = vmatpush3.bf16.msra.mxu1 %v438_v12 }
  0x48   :  { %407 = vmatprep.subr.bf16.mxu1 %v439_v14 }
  0x49   :  { %388 = vmatpush3.bf16.msra.mxu0 %v431_v9 }
  0x4a   :  { %389 = vmatprep.subr.bf16.mxu0 %v432_v11 }
  0x4b   :  { %408 = vmatpush3.bf16.msra.mxu1 %v439_v14 }
  0x4c   :  { %409 = vmatprep.subr.bf16.mxu1 %v440_v16 }
  0x4d   :  { %390 = vmatpush3.bf16.msra.mxu0 %v432_v11 }
  0x4e   :  { %391 = vmatprep.subr.bf16.mxu0 %v433_v13 }
  0x4f   :  { %410 = vmatpush3.bf16.msra.mxu1 %v440_v16 }
  0x50   :  { %411 = vmatprep.subr.bf16.mxu1 %v441_v20 }
  0x51   :  { %392 = vmatpush3.bf16.msra.mxu0 %v433_v13 }
  0x52   :  { %393 = vmatprep.subr.bf16.mxu0 %v434_v15 }
  0x53   :  { %412 = vmatpush3.bf16.msra.mxu1 %v441_v20 }
  0x54   :  { %413 = vmatprep.subr.bf16.mxu1 %v442_v21 }
  0x55   :  { %394 = vmatpush3.bf16.msra.mxu0 %v434_v15 }
  0x57   :  { %414 = vmatpush3.bf16.msra.mxu1 %v442_v21 }
  0x58   :  { %396 = vmatmul.mubr.bf16.vlgmr.msra.gmra.mrb[0].mxu0 %v68_v19 }
 0x12b   :  { %v397_v23 = vpop.f32.mrb[0].mxu0 }
 0x12c   :  { %v183_v24 = vadd.f32 %v397_v23, %v341_v22  ;;  %v174_v25 = vpop.f32.mrb[1].mxu0 }
 0x12d   :  { %v175_v26 = vadd.f32 %v341_v22, %v174_v25  ;;  %v398_v27 = vpop.f32.mrb[2].mxu0 }
 0x12e   :  { %v186_v28 = vadd.f32 %v398_v27, %v341_v22  ;;  %v177_v29 = vpop.f32.mrb[3].mxu0  ;;  %v191_v31 = vmax.f32 %v183_v24, 0.0 }
 0x12f   :  { %v178_v30 = vadd.f32 %v341_v22, %v177_v29  ;;  %v189_v33 = vmax.f32 %v175_v26, 0.0 }
 0x130   :  { %v192_v32 = vmax.f32 %v186_v28, 0.0 }
 0x131   :  { %v190_v34 = vmax.f32 %v178_v30, 0.0 }
 0x132   :  { %v194_v35 = vpack.c.bf16 %v192_v32, %v191_v31 }
 0x133   :  { %v193_v36 = vpack.c.bf16 %v190_v34, %v189_v33 }
 0x135   :  { %415 = vmatprep.mubr.bf16.mxu1 %v193_v36 }
 0x136   :  { %416 = vmatmul.mubr.bf16.vlgmr.msra.gmra.mrb[0].mxu1 %v194_v35 }
 0x209   :  { %v417_v38 = vpop.f32.mrb[0].mxu1 }
 0x20a   :  { %v309_v39 = vadd.f32 %v417_v38, %v350_v37  ;;  %v300_v40 = vpop.f32.mrb[1].mxu1 }
 0x20b   :  { %v301_v41 = vadd.f32 %v350_v37, %v300_v40  ;;  %v418_v42 = vpop.f32.mrb[2].mxu1 }
 0x20c   :  { %v317_v43 = vmax.f32 %v309_v39, 0.0  ;;  %v312_v44 = vadd.f32 %v418_v42, %v350_v37  ;;  %v303_v45 = vpop.f32.mrb[3].mxu1 }
 0x20d   :  { %v315_v46 = vmax.f32 %v301_v41, 0.0  ;;  %v304_v47 = vadd.f32 %v350_v37, %v303_v45 }
 0x20e   :  { %321 = vst [vmem:[#allocation8 + $0x10] sm:$0xff] %v317_v43  ;;  %v318_v48 = vmax.f32 %v312_v44, 0.0 }
 0x20f   :  { %319 = vst [vmem:[#allocation8] sm:$0xff] %v315_v46  ;;  %v316_v49 = vmax.f32 %v304_v47, 0.0 }
 0x210   :  { %322 = vst [vmem:[#allocation8 + $0x18] sm:$0xff] %v318_v48 }
 0x211   :  { %320 = vst [vmem:[#allocation8 + $0x8] sm:$0xff] %v316_v49 }
 0x212   :  { %520 = shalt.err (!%p517_p0)
}
 0x213   :  { %s521_s12 = scalar_lea.hbm %s646_s5, 512 }
 0x214   :  { %p522_p1 = scmp.ne.s32.totalorder %s646_s5, %s521_s12  ;;  %p525_p2 = scmp.lt.u32.totalorder %s521_s12, %s646_s5 }
 0x216   :  { %p527_p3 = pnand %p525_p2, %p522_p1 }
 0x218   :  { %530 = shalt.err (!%p527_p3)
}
 0x219   :  { %334 = dma.vmem_to_hbm [thread:$0]  %s329_s9, 512, %s646_s5, [#allocation4], %s541_s1, %s541_s1, %s542_s17  }
 0x21a   :  { %535 = dma.done.wait [#allocation4], 512  }
 0x21b   :  { %536 = vsyncadd [#allocation4], 4294966784 }
 0x21c   :  { %338 = vsyncpa [#allocation3], 1 }
 0x21d   :  { %339 = vsyncpa [#allocation6], 1 }
 0x21e   :  { %340 = vsyncpa [#allocation4], 1 }

</bundles_post_ra>
